<compile_context>
chip_gen: v5e
topology: v5e:2x2
jax: 0.10.0
libtpu: 0.0.40
codegen_flags: <defaults>
</compile_context>

<pallas_src>
import functools

import jax
import jax.numpy as jnp
from jax.experimental import pallas as pl
from jax.experimental.pallas import tpu as pltpu

_LANES = 128
_MIB = 1024 * 1024


def _chip_config():
    """Return (target_tile_rows, vmem_limit_bytes, num_parallel) per generation."""
    vmem_cap = None
    try:
        info = pltpu.get_tpu_info()
        for name in ("vmem_capacity_bytes", "vmem_size_bytes", "vmem_bytes"):
            v = getattr(info, name, None)
            if v:
                vmem_cap = int(v)
                break
    except Exception:
        vmem_cap = None

    kind = ""
    try:
        kind = jax.devices()[0].device_kind.lower()
    except Exception:
        kind = ""

    # v4 / v5p / v7x expose two TensorCores behind one device; v5e / v6e are
    # single-TC, where a 2-way "parallel" split only serializes (and can force
    # a wasted duplicate block).
    num_parallel = 2 if any(t in kind for t in ("v4", "v5p", "v7", "7x")) else 1

    if vmem_cap is None and kind and not any(t in kind for t in ("v7", "7x")):
        vmem_cap = 128 * _MIB  # pre-v7 generations: 128 MiB VMEM per core

    if vmem_cap is not None and vmem_cap >= 96 * _MIB:
        # v5e / v6e / v5p: 8 MiB/input tiles, 48 MiB double-buffered.
        return 16384, 64 * _MIB, num_parallel
    # v7x (64 MiB physical VMEM) or unknown chip: conservative everywhere.
    return 8192, 44 * _MIB, num_parallel


def _detloss_kernel(ir_ref, g_ref, m_ref, out_ref, *,
                    tile_rows, k_steps, valid_rows, need_mask, acc_sublanes):
    p = pl.program_id(0)
    k = pl.program_id(1)

    # out_ref is a (1, acc_sublanes, 128) f32 accumulator, resident across the
    # whole "arbitrary" k axis (its index_map depends only on p).
    @pl.when(k == 0)
    def _():
        out_ref[...] = jnp.zeros_like(out_ref)

    ir = ir_ref[...].astype(jnp.float32)
    g = g_ref[...].astype(jnp.float32)
    m = m_ref[...].astype(jnp.float32)
    a = jnp.abs(m * (g - ir))                          # VPU elementwise

    def fold(x):
        # Fold rows into per-(sublane, lane) partial sums: pure vreg adds, no
        # per-step cross-sublane XLU reduce.
        if acc_sublanes == 8:
            return jnp.sum(x.reshape(tile_rows // 8, 8, _LANES), axis=0)
        return jnp.sum(x, axis=0, keepdims=True)       # tiny single-block case

    if need_mask:
        # Only the tail block(s) — partial last block and (rare) clamped
        # duplicate blocks — pay for the iota/compare/select mask.  Interior
        # steps take the bare unmasked path.
        row0 = (p * k_steps + k) * tile_rows
        is_tail = (row0 + tile_rows) > valid_rows

        @pl.when(jnp.logical_not(is_tail))
        def _():
            out_ref[...] += fold(a).reshape(1, acc_sublanes, _LANES)

        @pl.when(is_tail)
        def _():
            row_idx = row0 + jax.lax.broadcasted_iota(jnp.int32, a.shape, 0)
            masked = jnp.where(row_idx < valid_rows, a, 0.0)
            out_ref[...] += fold(masked).reshape(1, acc_sublanes, _LANES)
    else:
        out_ref[...] += fold(a).reshape(1, acc_sublanes, _LANES)


def det_loss(image_ir, generate_img, m, *,
             _target_tile_rows=None, _num_parallel=None):
    """Pallas implementation of DetLoss.forward. Returns a scalar f32."""
    assert image_ir.shape == generate_img.shape == m.shape
    n = image_ir.size

    target_tile_rows, vmem_limit, num_parallel = _chip_config()
    if _target_tile_rows is not None:      # test hooks only
        target_tile_rows = _target_tile_rows
    if _num_parallel is not None:
        num_parallel = _num_parallel

    def prep(x):
        flat = x.reshape(-1)                  # free for contiguous inputs
        pad = (-n) % _LANES
        if pad:                               # rare ragged lane-tail only
            flat = jnp.pad(flat, (0, pad))    # zeros contribute 0 to the sum
        return flat.reshape(-1, _LANES)

    ir2 = prep(image_ir)
    g2 = prep(generate_img)
    m2 = prep(m)
    rows = ir2.shape[0]

    if rows <= target_tile_rows:
        # Single block covers everything: no split, no mask.
        num_parallel = 1
        k_steps = 1
        tile_rows = rows                      # == full dim -> always legal
    else:
        # Derive tile_rows so the P*K steps split the rows evenly: avoids both
        # the always-on mask and any fully-redundant duplicate block.
        k_steps = -(-rows // (num_parallel * target_tile_rows))
        total_steps = num_parallel * k_steps
        tile_rows = -(-rows // total_steps)
        tile_rows = ((tile_rows + 15) // 16) * 16   # bf16-legal sublane tiling

    total_steps = num_parallel * k_steps
    need_mask = (total_steps * tile_rows) != rows
    last_block = (rows - 1) // tile_rows            # last block with start < rows
    clamp_needed = (total_steps - 1) > last_block   # fully-OOB block exists (rare)
    acc_sublanes = 8 if tile_rows % 8 == 0 else 1

    if clamp_needed:
        # Never issue a fully out-of-bounds DMA; the in-kernel tail mask zeroes
        # the duplicated block's contribution.
        def in_index_map(pi, ki):
            return (jnp.minimum(pi * k_steps + ki, last_block), 0)
    else:
        def in_index_map(pi, ki):
            return (pi * k_steps + ki, 0)

    tile_spec = pl.BlockSpec((tile_rows, _LANES), in_index_map)
    out_spec = pl.BlockSpec((1, acc_sublanes, _LANES), lambda pi, ki: (pi, 0, 0))

    kernel = functools.partial(
        _detloss_kernel,
        tile_rows=tile_rows,
        k_steps=k_steps,
        valid_rows=rows,
        need_mask=need_mask,
        acc_sublanes=acc_sublanes,
    )

    bytes_accessed = int(
        ir2.size * ir2.dtype.itemsize
        + g2.size * g2.dtype.itemsize
        + m2.size * m2.dtype.itemsize
        + num_parallel * acc_sublanes * _LANES * 4)

    partials = pl.pallas_call(
        kernel,
        out_shape=jax.ShapeDtypeStruct(
            (num_parallel, acc_sublanes, _LANES), jnp.float32),
        grid_spec=pltpu.PrefetchScalarGridSpec(
            num_scalar_prefetch=0,
            grid=(num_parallel, k_steps),
            in_specs=[tile_spec, tile_spec, tile_spec],
            out_specs=out_spec,
        ),
        compiler_params=pltpu.CompilerParams(
            dimension_semantics=("parallel", "arbitrary"),
            vmem_limit_bytes=vmem_limit,
        ),
        cost_estimate=pl.CostEstimate(
            flops=4 * n, transcendentals=0, bytes_accessed=bytes_accessed),
    )(ir2, g2, m2)

    # Single tiny cross-sublane/lane reduction outside the hot loop; divide by
    # the ORIGINAL element count (padded / masked elements contributed 0).
    return (jnp.sum(partials) / jnp.float32(n)).astype(jnp.float32)


if __name__ == "__main__":
    key = jax.random.PRNGKey(0)
    k1, k2, k3 = jax.random.split(key, 3)

    # Small NCHW shapes consistent with an image-fusion loss.
    B, C, H, W = 2, 4, 16, 16
    image_ir = jax.random.normal(k1, (B, C, H, W), dtype=jnp.float32)
    generate_img = jax.random.normal(k2, (B, C, H, W), dtype=jnp.float32)
    m = jax.random.uniform(k3, (B, C, H, W), dtype=jnp.float32)

    loss = jax.block_until_ready(det_loss(image_ir, generate_img, m))
    ref = jnp.mean(jnp.abs(m * generate_img - m * image_ir))
    assert jnp.allclose(loss, ref, rtol=1e-5, atol=1e-6), (loss, ref)

    # Exercise the multi-block / 2-way-parallel / partial-tail-mask path at
    # small shapes by shrinking the target tile (production inputs hit it
    # naturally).  (2,4,25,64) -> 12800 elems -> 100 rows; tile_rows=32,
    # 4 blocks, only the last block is partial.
    Ba, Ca, Ha, Wa = 2, 4, 25, 64
    ir_a = jax.random.normal(k1, (Ba, Ca, Ha, Wa), dtype=jnp.float32)
    g_a = jax.random.normal(k2, (Ba, Ca, Ha, Wa), dtype=jnp.float32)
    m_a = jax.random.uniform(k3, (Ba, Ca, Ha, Wa), dtype=jnp.float32)
    loss_a = jax.block_until_ready(
        det_loss(ir_a, g_a, m_a, _target_tile_rows=40, _num_parallel=2))
    ref_a = jnp.mean(jnp.abs(m_a * g_a - m_a * ir_a))
    assert jnp.allclose(loss_a, ref_a, rtol=1e-5, atol=1e-6), (loss_a, ref_a)

    # Exercise the rare clamped fully-out-of-range duplicate-block path:
    # (2,4,24,64) -> 12288 elems -> 96 rows; tile_rows=32, 4 grid steps but
    # only 3 real blocks -> step (1,1) is clamped and fully masked to zero.
    Bb, Cb, Hb, Wb = 2, 4, 24, 64
    ir_b = jax.random.normal(k1, (Bb, Cb, Hb, Wb), dtype=jnp.float32)
    g_b = jax.random.normal(k2, (Bb, Cb, Hb, Wb), dtype=jnp.float32)
    m_b = jax.random.uniform(k3, (Bb, Cb, Hb, Wb), dtype=jnp.float32)
    loss_b = jax.block_until_ready(
        det_loss(ir_b, g_b, m_b, _target_tile_rows=40, _num_parallel=2))
    ref_b = jnp.mean(jnp.abs(m_b * g_b - m_b * ir_b))
    assert jnp.allclose(loss_b, ref_b, rtol=1e-5, atol=1e-6), (loss_b, ref_b)

    print("KERNEL_OK")
</pallas_src>

<mosaic_0001>
module attributes {stable_mosaic.version = 11 : i64} {
  func.func @_detloss_kernel(%arg0: i32, %arg1: i32, %arg2: memref<16x128xf32, #tpu.memory_space<vmem>>, %arg3: memref<16x128xf32, #tpu.memory_space<vmem>>, %arg4: memref<16x128xf32, #tpu.memory_space<vmem>>, %arg5: memref<1x8x128xf32, #tpu.memory_space<vmem>>) attributes {dimension_semantics = [#tpu.dimension_semantics<parallel>, #tpu.dimension_semantics<arbitrary>], iteration_bounds = array<i64: 1, 1>, scalar_prefetch = 0 : i64, scratch_operands = 0 : i64, tpu.core_type = #tpu.core_type<tc>, window_params = [{transform_indices = @transform_0, window_bounds = array<i64: 16, 128>}, {transform_indices = @transform_1, window_bounds = array<i64: 16, 128>}, {transform_indices = @transform_2, window_bounds = array<i64: 16, 128>}, {transform_indices = @transform_3, window_bounds = array<i64: 1, 8, 128>}]} {
    %c0_i32 = arith.constant 0 : i32
    %0 = arith.cmpi eq, %arg1, %c0_i32 : i32
    %1 = arith.extui %0 : i1 to i32
    %c0_i32_0 = arith.constant 0 : i32
    %2 = arith.cmpi ne, %1, %c0_i32_0 : i32
    scf.if %2 {
      %cst_12 = arith.constant 0.000000e+00 : f32
      %15 = vector.broadcast %cst_12 : f32 to vector<1x8x128xf32>
      %c0_13 = arith.constant 0 : index
      %c0_14 = arith.constant 0 : index
      %c0_15 = arith.constant 0 : index
      %16 = vector.load %arg5[%c0_13, %c0_14, %c0_15] : memref<1x8x128xf32, #tpu.memory_space<vmem>>, vector<1x8x128xf32>
      tpu.vector_store %arg5[%c0_13, %c0_14, %c0_15], %15 {strides = array<i32>} : memref<1x8x128xf32, #tpu.memory_space<vmem>>, vector<1x8x128xf32>,
    } else {
    }
    %c0 = arith.constant 0 : index
    %c0_1 = arith.constant 0 : index
    %3 = vector.load %arg2[%c0, %c0_1] : memref<16x128xf32, #tpu.memory_space<vmem>>, vector<16x128xf32>
    %c0_2 = arith.constant 0 : index
    %c0_3 = arith.constant 0 : index
    %4 = vector.load %arg3[%c0_2, %c0_3] : memref<16x128xf32, #tpu.memory_space<vmem>>, vector<16x128xf32>
    %c0_4 = arith.constant 0 : index
    %c0_5 = arith.constant 0 : index
    %5 = vector.load %arg4[%c0_4, %c0_5] : memref<16x128xf32, #tpu.memory_space<vmem>>, vector<16x128xf32>
    %6 = arith.subf %4, %3 : vector<16x128xf32>
    %7 = arith.mulf %5, %6 : vector<16x128xf32>
    %8 = math.absf %7 : vector<16x128xf32>
    %c0_6 = arith.constant 0 : index
    %c0_7 = arith.constant 0 : index
    %c0_8 = arith.constant 0 : index
    %9 = vector.load %arg5[%c0_6, %c0_7, %c0_8] : memref<1x8x128xf32, #tpu.memory_space<vmem>>, vector<1x8x128xf32>
    %10 = vector.shape_cast %8 : vector<16x128xf32> to vector<2x8x128xf32>
    %cst = arith.constant dense<0.000000e+00> : vector<8x128xf32>
    %11 = vector.multi_reduction <add>, %10, %cst [0] : vector<2x8x128xf32> to vector<8x128xf32>
    %12 = vector.shape_cast %11 : vector<8x128xf32> to vector<1x8x128xf32>
    %13 = arith.addf %9, %12 : vector<1x8x128xf32>
    %c0_9 = arith.constant 0 : index
    %c0_10 = arith.constant 0 : index
    %c0_11 = arith.constant 0 : index
    %14 = vector.load %arg5[%c0_9, %c0_10, %c0_11] : memref<1x8x128xf32, #tpu.memory_space<vmem>>, vector<1x8x128xf32>
    tpu.vector_store %arg5[%c0_9, %c0_10, %c0_11], %13 {strides = array<i32>} : memref<1x8x128xf32, #tpu.memory_space<vmem>>, vector<1x8x128xf32>,
    return
  }
  func.func @transform_0(%arg0: i32, %arg1: i32) -> (i32, i32) {
    %c1_i32 = arith.constant 1 : i32
    %0 = arith.muli %arg0, %c1_i32 : i32
    %1 = arith.addi %0, %arg1 : i32
    %c0_i32 = arith.constant 0 : i32
    %c0_i32_0 = arith.constant 0 : i32
    return %1, %c0_i32 : i32, i32
  }
  func.func @transform_1(%arg0: i32, %arg1: i32) -> (i32, i32) {
    %c1_i32 = arith.constant 1 : i32
    %0 = arith.muli %arg0, %c1_i32 : i32
    %1 = arith.addi %0, %arg1 : i32
    %c0_i32 = arith.constant 0 : i32
    %c0_i32_0 = arith.constant 0 : i32
    return %1, %c0_i32 : i32, i32
  }
  func.func @transform_2(%arg0: i32, %arg1: i32) -> (i32, i32) {
    %c1_i32 = arith.constant 1 : i32
    %0 = arith.muli %arg0, %c1_i32 : i32
    %1 = arith.addi %0, %arg1 : i32
    %c0_i32 = arith.constant 0 : i32
    %c0_i32_0 = arith.constant 0 : i32
    return %1, %c0_i32 : i32, i32
  }
  func.func @transform_3(%arg0: i32, %arg1: i32) -> (i32, i32, i32) {
    %c0_i32 = arith.constant 0 : i32
    %c0_i32_0 = arith.constant 0 : i32
    %c0_i32_1 = arith.constant 0 : i32
    return %arg0, %c0_i32, %c0_i32_0 : i32, i32, i32
  }
}

</mosaic_0001>

<bundles_post_ra>
// kernel: tpu_custom_call.1
= control target key start
LH: loop header
LB: loop body
LE: loop exit
PB: predicated region body
PF: predicated region fallthrough
CT: control target
= control target key end

     0   :  { %8 = vsyncpa [#allocation3], 0  ;;  %s266_s0 = inlined_call_operand.hbm [shape: f32[16,128], index: 0, kind: input, shape index: {}]   ;;  %s267_s1 = inlined_call_operand.hbm [shape: f32[16,128], index: 1, kind: input, shape index: {}]   ;;  %s268_s2 = inlined_call_operand.hbm [shape: f32[16,128], index: 2, kind: input, shape index: {}]   ;;  %s269_s3 = inlined_call_operand.hbm [shape: f32[1,8,128], index: 3, kind: output, shape index: {}]  }
   0x1   :  { %9 = vsyncpa [#allocation6], 0 }
   0x2   :  { %10 = vsyncpa [#allocation4], 0  ;;  %s36_s14 = sshll.u32 %s267_s1, 4  ;;  %s228_s15 = smov [#allocation5]   ;;  %s37_s14 = int_to_ptr.hbm [resolvable:$true] %s36_s14 }
   0x3   :  { %s38_s16 = sshll.u32 %s228_s15, 4  ;;  %s19_s19 = sshll.u32 %s266_s0, 4  ;;  %s39_s16 = int_to_ptr.vmem [resolvable:$true] %s38_s16  ;;  %s20_s19 = int_to_ptr.hbm [resolvable:$true] %s19_s19 }
   0x4   :  { %s229_s20 = smov 128   ;;  %s230_s21 = smov 8  }
   0x5   :  { %44 = dma.hbm_to_vmem [thread:$0]  %s37_s14, 256, %s39_s16, [#allocation6], %s229_s20, %s229_s20, %s230_s21  }
   0x6   :  { %s231_s22 = smov [#allocation2]   ;;  %s53_s26 = sshll.u32 %s268_s2, 4  ;;  %s54_s26 = int_to_ptr.hbm [resolvable:$true] %s53_s26 }
   0x7   :  { %s21_s23 = sshll.u32 %s231_s22, 4  ;;  %s232_s1 = smov [#allocation7]   ;;  %s22_s23 = int_to_ptr.vmem [resolvable:$true] %s21_s23 }
   0x8   :  { %27 = dma.hbm_to_vmem [thread:$0]  %s20_s19, 256, %s22_s23, [#allocation3], %s229_s20, %s229_s20, %s230_s21  }
   0x9   :  { %s55_s27 = sshll.u32 %s232_s1, 4  ;;  %s56_s27 = int_to_ptr.vmem [resolvable:$true] %s55_s27 }
   0xa   :  { %61 = dma.hbm_to_vmem [thread:$0]  %s54_s26, 256, %s56_s27, [#allocation6], %s229_s20, %s229_s20, %s230_s21  }
   0xb   :  { %222 = dma.done.wait [#allocation3], 256  }
   0xc   :  { %223 = vsyncadd [#allocation3], 4294967040 }
   0xd   :  { %224 = dma.done.wait [#allocation6], 512  }
   0xe   :  { %225 = vsyncadd [#allocation6], 4294966784  ;;  %v85_v0 = vld [vmem:[#allocation2] sm:$0xff]  ;;  %v86_v1 = vld [vmem:[#allocation2 + $0x8] sm:$0xff]  ;;  %s233_s0 = smov [#allocation8]   ;;  %s108_s30 = sshll.u32 %s269_s3, 4  ;;  %s109_s30 = int_to_ptr.hbm [resolvable:$true] %s108_s30 }
   0xf   :  { %v87_v2 = vld [vmem:[#allocation5] sm:$0xff]  ;;  %v88_v3 = vld [vmem:[#allocation5 + $0x8] sm:$0xff]  ;;  %v89_v4 = vld [vmem:[#allocation7] sm:$0xff]  ;;  %s106_s2 = sshll.u32 %s233_s0, 4  ;;  %s107_s2 = int_to_ptr.vmem [resolvable:$true] %s106_s2 }
  0x10   :  { %v90_v5 = vld [vmem:[#allocation7 + $0x8] sm:$0xff]  ;;  %v91_v6 = vsub.f32 %v87_v2, %v85_v0  ;;  %v92_v7 = vsub.f32 %v88_v3, %v86_v1 }
  0x12   :  { %v93_v8 = vmul.f32 %v91_v6, %v89_v4  ;;  %v94_v9 = vmul.f32 %v92_v7, %v90_v5 }
  0x14   :  { %v95_v10 = vand.u32 2147483647, %v93_v8  ;;  %v96_v11 = vand.u32 2147483647, %v94_v9 }
  0x16   :  { %v98_v12 = vadd.f32 %v96_v11, %v95_v10 }
  0x18   :  { %100 = vst [vmem:[#allocation8] sm:$0xff] %v98_v12 }
  0x19   :  { %111 = dma.vmem_to_hbm [thread:$0]  %s107_s2, 128, %s109_s30, [#allocation4]  }
  0x1a   :  { %226 = dma.done.wait [#allocation4], 128  }
  0x1b   :  { %227 = vsyncadd [#allocation4], 4294967168 }
  0x1c   :  { %116 = vsyncpa [#allocation3], 1 }
  0x1d   :  { %117 = vsyncpa [#allocation6], 1 }
  0x1e   :  { %118 = vsyncpa [#allocation4], 1 }

</bundles_post_ra>
